<compile_context>
chip_gen: v5e
topology: v5e:2x2
jax: 0.10.0
libtpu: 0.0.40
codegen_flags: <defaults>
</compile_context>

<pallas_src>
import functools

import jax
import jax.numpy as jnp
import numpy as np
from jax.experimental import pallas as pl
from jax.experimental.pallas import tpu as pltpu


def _round_up(v, m):
    return ((v + m - 1) // m) * m


# ----------------------------------------------------------------------------
# Kernel 1: act1 — spike mask (0/1) + per-timestep partial sums of |mem|
#   grid over token tiles (parallel); T recurrence unrolled inside the block.
# ----------------------------------------------------------------------------
def _act1_kernel(x_ref, spike_ref, sums_ref):
    T = x_ref.shape[0]
    mem = None
    spike = None
    partials = []
    for t in range(T):  # T == 4, static -> unrolled
        xt = x_ref[t]                                        # (tn, Cp) f32
        if t == 0:
            mem = xt
        else:
            mem = 0.25 * mem * (1.0 - spike) + xt
        spike = (mem > 0.0).astype(jnp.float32)
        spike_ref[t] = spike.astype(spike_ref.dtype)         # exact 0/1 in bf16
        partials.append(jnp.sum(jnp.abs(mem)))               # scalar partial sum
    # Pack the T scalar partial sums into a lane-dense (8,128) slab (row t holds
    # partial_t broadcast across lanes; rows >= T are zero).
    rows = jax.lax.broadcasted_iota(jnp.int32, (8, 128), 0)
    slab = jnp.zeros((8, 128), jnp.float32)
    for t in range(T):
        slab = jnp.where(rows == t, partials[t], slab)
    sums_ref[0] = slab


def act1_pallas(x_p, tn):
    T, Np, Cp = x_p.shape
    nN = Np // tn
    return pl.pallas_call(
        _act1_kernel,
        out_shape=(
            jax.ShapeDtypeStruct((T, Np, Cp), jnp.bfloat16),   # spike mask
            jax.ShapeDtypeStruct((nN, 8, 128), jnp.float32),   # per-tile |mem| sums
        ),
        grid=(nN,),
        in_specs=[pl.BlockSpec((T, tn, Cp), lambda i: (0, i, 0))],
        out_specs=(
            pl.BlockSpec((T, tn, Cp), lambda i: (0, i, 0)),
            pl.BlockSpec((1, 8, 128), lambda i: (i, 0, 0)),
        ),
        compiler_params=pltpu.CompilerParams(dimension_semantics=("parallel",)),
    )(x_p)


# ----------------------------------------------------------------------------
# Kernel 2: fc + act2 fused.
#   h_t = alpha1[t] * (spike1_t @ W1) + b1   (alpha1 folded post-matmul, exact)
#   then the act2 mem recurrence over T, emitting spike2 mask + partial |mem| sums.
#   Weights are pre-transposed to (Cp, Ip) wrapper-side (no in-kernel .T).
# ----------------------------------------------------------------------------
def _fc_act2_kernel(alpha_ref, s1_ref, w_ref, b_ref, s2_ref, sums_ref,
                    *, n_real, tn, masked):
    T = s1_ref.shape[0]
    w = w_ref[...]                                           # (Cp, Ip) f32, grid-invariant
    b = b_ref[...]                                           # (1, Ip)  f32, grid-invariant
    if masked:
        row = jax.lax.broadcasted_iota(jnp.int32, (tn, 1), 0) + pl.program_id(0) * tn
        valid = (row < n_real).astype(jnp.float32)           # zero out padded token rows
    mem = None
    spike = None
    partials = []
    for t in range(T):
        acc = jnp.dot(s1_ref[t].astype(jnp.float32), w,
                      preferred_element_type=jnp.float32)     # MXU, f32 accumulate
        h = alpha_ref[t] * acc + b                            # scalar alpha from SMEM
        if masked:
            h = h * valid
        if t == 0:
            mem = h
        else:
            mem = 0.25 * mem * (1.0 - spike) + h
        spike = (mem > 0.0).astype(jnp.float32)
        s2_ref[t] = spike.astype(s2_ref.dtype)
        partials.append(jnp.sum(jnp.abs(mem)))
    rows = jax.lax.broadcasted_iota(jnp.int32, (8, 128), 0)
    slab = jnp.zeros((8, 128), jnp.float32)
    for t in range(T):
        slab = jnp.where(rows == t, partials[t], slab)
    sums_ref[0] = slab


def fc_act2_pallas(alpha1, spike1, w1t, b1, tn, n_real):
    T, Np, Cp = spike1.shape
    Ip = w1t.shape[1]
    nN = Np // tn
    masked = (Np != n_real)
    kernel = functools.partial(_fc_act2_kernel, n_real=n_real, tn=tn, masked=masked)
    # NOTE: whole (Cp, Ip) weight block stays VMEM-resident; for production sizes
    # exceeding the VMEM budget (esp. v7x 64 MiB) add Dout/K grid axes with a
    # pl.when-initialized accumulator.
    return pl.pallas_call(
        kernel,
        out_shape=(
            jax.ShapeDtypeStruct((T, Np, Ip), jnp.bfloat16),   # spike2 mask
            jax.ShapeDtypeStruct((nN, 8, 128), jnp.float32),   # per-tile |mem| sums
        ),
        grid_spec=pltpu.PrefetchScalarGridSpec(
            num_scalar_prefetch=1,                             # alpha1 (T,) -> SMEM
            grid=(nN,),
            in_specs=[
                pl.BlockSpec((T, tn, Cp), lambda i, a: (0, i, 0)),
                pl.BlockSpec((Cp, Ip), lambda i, a: (0, 0)),
                pl.BlockSpec((1, Ip), lambda i, a: (0, 0)),
            ],
            out_specs=(
                pl.BlockSpec((T, tn, Ip), lambda i, a: (0, i, 0)),
                pl.BlockSpec((1, 8, 128), lambda i, a: (i, 0, 0)),
            ),
        ),
        compiler_params=pltpu.CompilerParams(dimension_semantics=("parallel",)),
    )(alpha1, spike1, w1t, b1)


# ----------------------------------------------------------------------------
# Kernel 3: proj (NormedLinear) as a pure matmul; normalized/pre-transposed weight
#   comes from the wrapper; alpha2[t] folded post-matmul in f32 (exact).
# ----------------------------------------------------------------------------
def _proj_kernel(alpha_ref, s2_ref, w_ref, b_ref, o_ref):
    t = pl.program_id(0)
    acc = jnp.dot(s2_ref[0].astype(jnp.float32), w_ref[...],
                  preferred_element_type=jnp.float32)
    o_ref[0] = (alpha_ref[t] * acc + b_ref[...]).astype(o_ref.dtype)


def proj_pallas(alpha2, spike2, w2t, b2, tn):
    T, Np, Ip = spike2.shape
    Cp = w2t.shape[1]
    nN = Np // tn
    return pl.pallas_call(
        _proj_kernel,
        out_shape=jax.ShapeDtypeStruct((T, Np, Cp), jnp.float32),
        grid_spec=pltpu.PrefetchScalarGridSpec(
            num_scalar_prefetch=1,                             # alpha2 (T,) -> SMEM
            grid=(T, nN),
            in_specs=[
                pl.BlockSpec((1, tn, Ip), lambda t, i, a: (t, i, 0)),
                pl.BlockSpec((Ip, Cp), lambda t, i, a: (0, 0)),
                pl.BlockSpec((1, Cp), lambda t, i, a: (0, 0)),
            ],
            out_specs=pl.BlockSpec((1, tn, Cp), lambda t, i, a: (t, i, 0)),
        ),
        compiler_params=pltpu.CompilerParams(
            dimension_semantics=("parallel", "parallel")),
    )(alpha2, spike2, w2t, b2)


# ----------------------------------------------------------------------------
# Full GptNeoxMLP forward (padding, weight prep and tiny alpha reductions in JAX)
# ----------------------------------------------------------------------------
def gpt_neox_mlp(x, fc_w, fc_b, pr_w, pr_b, pr_scale, *, token_tile=256):
    T, B, S, C = x.shape
    N = B * S
    I = fc_w.shape[0]
    assert T <= 8

    Cp = _round_up(C, 128)          # lane-dense channel dims
    Ip = _round_up(I, 128)
    tn = min(token_tile, _round_up(N, 16))   # multiple of 16 (bf16 sublane packing)
    nN = pl.cdiv(N, tn)
    Np = nN * tn

    xf = x.reshape(T, N, C).astype(jnp.float32)
    x_p = jnp.pad(xf, ((0, 0), (0, Np - N), (0, Cp - C)))     # zero-pad: exact

    # ---- act1: spike masks + global per-timestep alpha ----
    spike1, psum1 = act1_pallas(x_p, tn)
    alpha1 = 4.0 * psum1[:, :T, 0].sum(axis=0) / (N * C)      # (T,) f32

    # ---- fc + act2 fused (alpha1 folded post-matmul) ----
    w1t = jnp.pad(fc_w.T.astype(jnp.float32), ((0, Cp - C), (0, Ip - I)))
    b1 = jnp.pad(fc_b.astype(jnp.float32), (0, Ip - I)).reshape(1, Ip)
    spike2, psum2 = fc_act2_pallas(alpha1, spike1, w1t, b1, tn, n_real=N)
    alpha2 = 4.0 * psum2[:, :T, 0].sum(axis=0) / (N * I)      # (T,) f32

    # ---- proj: hoisted NormedLinear weight prep (once), alpha2 folded ----
    wn = pr_w.astype(jnp.float32)
    wn = wn - jnp.mean(wn, axis=0, keepdims=True)
    nrm = jnp.sqrt(jnp.sum(wn * wn, axis=0, keepdims=True))
    wn = pr_scale.astype(jnp.float32) * wn / jnp.maximum(nrm, 1e-12)
    w2t = jnp.pad(wn.T, ((0, Ip - I), (0, Cp - C)))           # (Ip, Cp)
    b2 = jnp.pad(pr_b.astype(jnp.float32), (0, Cp - C)).reshape(1, Cp)

    out = proj_pallas(alpha2, spike2, w2t, b2, tn)            # (T, Np, Cp)
    return out[:, :N, :C].reshape(T, B, S, C).astype(x.dtype)


# ----------------------------------------------------------------------------
# Pure-JAX reference (faithful to the PyTorch module) for the correctness check
# ----------------------------------------------------------------------------
def _heaviside_ref(x):
    T = x.shape[0]
    outs = []
    for i in range(T):
        if i == 0:
            mem = x[0]
        else:
            mem = 0.25 * mem_old * (1.0 - spike_prev) + x[i]
        alpha = 4.0 * jnp.mean(jnp.abs(mem))
        spike = (mem > 0.0).astype(x.dtype)
        outs.append(alpha * spike)
        mem_old, spike_prev = mem, spike
    return jnp.stack(outs)


def _mlp_ref(x, fc_w, fc_b, pr_w, pr_b, pr_scale):
    T, B, S, C = x.shape
    h = _heaviside_ref(x)
    h = h.reshape(T * B * S, C) @ fc_w.T + fc_b
    h = _heaviside_ref(h.reshape(T, B, S, -1))
    w = pr_w - jnp.mean(pr_w, axis=0, keepdims=True)
    w = pr_scale * w / jnp.maximum(jnp.sqrt(jnp.sum(w * w, axis=0, keepdims=True)), 1e-12)
    out = h.reshape(T * B * S, -1) @ w.T + pr_b
    return out.reshape(T, B, S, C)


if __name__ == "__main__":
    # Small config: n_embd=32, intermediate_size=128, bias=True, T=4 timesteps.
    T, B, S, C, I = 4, 2, 8, 32, 128
    key = jax.random.PRNGKey(0)
    kx, k1, k2, k3, k4 = jax.random.split(key, 5)

    x = jax.random.normal(kx, (T, B, S, C), dtype=jnp.float32)
    fc_w = jax.random.normal(k1, (I, C), dtype=jnp.float32) * (1.0 / np.sqrt(C))
    fc_b = jax.random.normal(k2, (I,), dtype=jnp.float32) * 0.02
    pr_w = jax.random.normal(k3, (C, I), dtype=jnp.float32) * (1.0 / np.sqrt(I))
    pr_b = jax.random.normal(k4, (C,), dtype=jnp.float32) * 0.02
    pr_scale = jnp.asarray(0.01, dtype=jnp.float32)

    out = jax.block_until_ready(gpt_neox_mlp(x, fc_w, fc_b, pr_w, pr_b, pr_scale))
    ref = jax.block_until_ready(_mlp_ref(x, fc_w, fc_b, pr_w, pr_b, pr_scale))

    assert out.shape == (T, B, S, C)
    np.testing.assert_allclose(np.asarray(out), np.asarray(ref), rtol=1e-5, atol=1e-5)
    print("KERNEL_OK")
</pallas_src>

<mosaic_0001>
module attributes {stable_mosaic.version = 11 : i64} {
  func.func @_act1_kernel(%arg0: i32, %arg1: memref<4x16x128xf32, #tpu.memory_space<vmem>>, %arg2: memref<4x16x128xbf16, #tpu.memory_space<vmem>>, %arg3: memref<1x8x128xf32, #tpu.memory_space<vmem>>) attributes {dimension_semantics = [#tpu.dimension_semantics<parallel>], iteration_bounds = array<i64: 1>, scalar_prefetch = 0 : i64, scratch_operands = 0 : i64, tpu.core_type = #tpu.core_type<tc>, window_params = [{transform_indices = @transform_0, window_bounds = array<i64: 4, 16, 128>}, {transform_indices = @transform_1, window_bounds = array<i64: 4, 16, 128>}, {transform_indices = @transform_2, window_bounds = array<i64: 1, 8, 128>}]} {
    %c0 = arith.constant 0 : index
    %c0_0 = arith.constant 0 : index
    %c0_1 = arith.constant 0 : index
    %0 = vector.load %arg1[%c0, %c0_0, %c0_1] : memref<4x16x128xf32, #tpu.memory_space<vmem>>, vector<1x16x128xf32>
    %1 = vector.shape_cast %0 : vector<1x16x128xf32> to vector<16x128xf32>
    %cst = arith.constant 0.000000e+00 : f32
    %2 = vector.broadcast %cst : f32 to vector<16x128xf32>
    %3 = arith.cmpf ogt, %1, %2 : vector<16x128xf32>
    %4 = arith.extui %3 : vector<16x128xi1> to vector<16x128xi32>
    %5 = arith.sitofp %4 : vector<16x128xi32> to vector<16x128xf32>
    %6 = arith.truncf %5 : vector<16x128xf32> to vector<16x128xbf16>
    %c0_2 = arith.constant 0 : index
    %c0_3 = arith.constant 0 : index
    %c0_4 = arith.constant 0 : index
    %7 = vector.load %arg2[%c0_2, %c0_3, %c0_4] : memref<4x16x128xbf16, #tpu.memory_space<vmem>>, vector<1x16x128xbf16>
    %8 = vector.shape_cast %7 : vector<1x16x128xbf16> to vector<16x128xbf16>
    %9 = vector.shape_cast %6 : vector<16x128xbf16> to vector<1x16x128xbf16>
    tpu.vector_store %arg2[%c0_2, %c0_3, %c0_4], %9 {strides = array<i32>} : memref<4x16x128xbf16, #tpu.memory_space<vmem>>, vector<1x16x128xbf16>,
    %10 = math.absf %1 : vector<16x128xf32>
    %11 = vector.shape_cast %10 : vector<16x128xf32> to vector<1x16x128xf32>
    %cst_5 = arith.constant dense<0.000000e+00> : vector<1xf32>
    %12 = vector.multi_reduction <add>, %11, %cst_5 [1, 2] : vector<1x16x128xf32> to vector<1xf32>
    %13 = vector.shape_cast %12 : vector<1xf32> to vector<1x1x1xf32>
    %14 = vector.extract %13[0, 0, 0] : f32 from vector<1x1x1xf32>
    %c1 = arith.constant 1 : index
    %c0_6 = arith.constant 0 : index
    %c0_7 = arith.constant 0 : index
    %15 = vector.load %arg1[%c1, %c0_6, %c0_7] : memref<4x16x128xf32, #tpu.memory_space<vmem>>, vector<1x16x128xf32>
    %16 = vector.shape_cast %15 : vector<1x16x128xf32> to vector<16x128xf32>
    %cst_8 = arith.constant 2.500000e-01 : f32
    %17 = vector.broadcast %cst_8 : f32 to vector<16x128xf32>
    %18 = arith.mulf %17, %1 : vector<16x128xf32>
    %cst_9 = arith.constant 1.000000e+00 : f32
    %19 = vector.broadcast %cst_9 : f32 to vector<16x128xf32>
    %20 = arith.subf %19, %5 : vector<16x128xf32>
    %21 = arith.mulf %18, %20 : vector<16x128xf32>
    %22 = arith.addf %21, %16 : vector<16x128xf32>
    %cst_10 = arith.constant 0.000000e+00 : f32
    %23 = vector.broadcast %cst_10 : f32 to vector<16x128xf32>
    %24 = arith.cmpf ogt, %22, %23 : vector<16x128xf32>
    %25 = arith.extui %24 : vector<16x128xi1> to vector<16x128xi32>
    %26 = arith.sitofp %25 : vector<16x128xi32> to vector<16x128xf32>
    %27 = arith.truncf %26 : vector<16x128xf32> to vector<16x128xbf16>
    %c1_11 = arith.constant 1 : index
    %c0_12 = arith.constant 0 : index
    %c0_13 = arith.constant 0 : index
    %28 = vector.load %arg2[%c1_11, %c0_12, %c0_13] : memref<4x16x128xbf16, #tpu.memory_space<vmem>>, vector<1x16x128xbf16>
    %29 = vector.shape_cast %28 : vector<1x16x128xbf16> to vector<16x128xbf16>
    %30 = vector.shape_cast %27 : vector<16x128xbf16> to vector<1x16x128xbf16>
    tpu.vector_store %arg2[%c1_11, %c0_12, %c0_13], %30 {strides = array<i32>} : memref<4x16x128xbf16, #tpu.memory_space<vmem>>, vector<1x16x128xbf16>,
    %31 = math.absf %22 : vector<16x128xf32>
    %32 = vector.shape_cast %31 : vector<16x128xf32> to vector<1x16x128xf32>
    %cst_14 = arith.constant dense<0.000000e+00> : vector<1xf32>
    %33 = vector.multi_reduction <add>, %32, %cst_14 [1, 2] : vector<1x16x128xf32> to vector<1xf32>
    %34 = vector.shape_cast %33 : vector<1xf32> to vector<1x1x1xf32>
    %35 = vector.extract %34[0, 0, 0] : f32 from vector<1x1x1xf32>
    %c2 = arith.constant 2 : index
    %c0_15 = arith.constant 0 : index
    %c0_16 = arith.constant 0 : index
    %36 = vector.load %arg1[%c2, %c0_15, %c0_16] : memref<4x16x128xf32, #tpu.memory_space<vmem>>, vector<1x16x128xf32>
    %37 = vector.shape_cast %36 : vector<1x16x128xf32> to vector<16x128xf32>
    %cst_17 = arith.constant 2.500000e-01 : f32
    %38 = vector.broadcast %cst_17 : f32 to vector<16x128xf32>
    %39 = arith.mulf %38, %22 : vector<16x128xf32>
    %cst_18 = arith.constant 1.000000e+00 : f32
    %40 = vector.broadcast %cst_18 : f32 to vector<16x128xf32>
    %41 = arith.subf %40, %26 : vector<16x128xf32>
    %42 = arith.mulf %39, %41 : vector<16x128xf32>
    %43 = arith.addf %42, %37 : vector<16x128xf32>
    %cst_19 = arith.constant 0.000000e+00 : f32
    %44 = vector.broadcast %cst_19 : f32 to vector<16x128xf32>
    %45 = arith.cmpf ogt, %43, %44 : vector<16x128xf32>
    %46 = arith.extui %45 : vector<16x128xi1> to vector<16x128xi32>
    %47 = arith.sitofp %46 : vector<16x128xi32> to vector<16x128xf32>
    %48 = arith.truncf %47 : vector<16x128xf32> to vector<16x128xbf16>
    %c2_20 = arith.constant 2 : index
    %c0_21 = arith.constant 0 : index
    %c0_22 = arith.constant 0 : index
    %49 = vector.load %arg2[%c2_20, %c0_21, %c0_22] : memref<4x16x128xbf16, #tpu.memory_space<vmem>>, vector<1x16x128xbf16>
    %50 = vector.shape_cast %49 : vector<1x16x128xbf16> to vector<16x128xbf16>
    %51 = vector.shape_cast %48 : vector<16x128xbf16> to vector<1x16x128xbf16>
    tpu.vector_store %arg2[%c2_20, %c0_21, %c0_22], %51 {strides = array<i32>} : memref<4x16x128xbf16, #tpu.memory_space<vmem>>, vector<1x16x128xbf16>,
    %52 = math.absf %43 : vector<16x128xf32>
    %53 = vector.shape_cast %52 : vector<16x128xf32> to vector<1x16x128xf32>
    %cst_23 = arith.constant dense<0.000000e+00> : vector<1xf32>
    %54 = vector.multi_reduction <add>, %53, %cst_23 [1, 2] : vector<1x16x128xf32> to vector<1xf32>
    %55 = vector.shape_cast %54 : vector<1xf32> to vector<1x1x1xf32>
    %56 = vector.extract %55[0, 0, 0] : f32 from vector<1x1x1xf32>
    %c3 = arith.constant 3 : index
    %c0_24 = arith.constant 0 : index
    %c0_25 = arith.constant 0 : index
    %57 = vector.load %arg1[%c3, %c0_24, %c0_25] : memref<4x16x128xf32, #tpu.memory_space<vmem>>, vector<1x16x128xf32>
    %58 = vector.shape_cast %57 : vector<1x16x128xf32> to vector<16x128xf32>
    %cst_26 = arith.constant 2.500000e-01 : f32
    %59 = vector.broadcast %cst_26 : f32 to vector<16x128xf32>
    %60 = arith.mulf %59, %43 : vector<16x128xf32>
    %cst_27 = arith.constant 1.000000e+00 : f32
    %61 = vector.broadcast %cst_27 : f32 to vector<16x128xf32>
    %62 = arith.subf %61, %47 : vector<16x128xf32>
    %63 = arith.mulf %60, %62 : vector<16x128xf32>
    %64 = arith.addf %63, %58 : vector<16x128xf32>
    %cst_28 = arith.constant 0.000000e+00 : f32
    %65 = vector.broadcast %cst_28 : f32 to vector<16x128xf32>
    %66 = arith.cmpf ogt, %64, %65 : vector<16x128xf32>
    %67 = arith.extui %66 : vector<16x128xi1> to vector<16x128xi32>
    %68 = arith.sitofp %67 : vector<16x128xi32> to vector<16x128xf32>
    %69 = arith.truncf %68 : vector<16x128xf32> to vector<16x128xbf16>
    %c3_29 = arith.constant 3 : index
    %c0_30 = arith.constant 0 : index
    %c0_31 = arith.constant 0 : index
    %70 = vector.load %arg2[%c3_29, %c0_30, %c0_31] : memref<4x16x128xbf16, #tpu.memory_space<vmem>>, vector<1x16x128xbf16>
    %71 = vector.shape_cast %70 : vector<1x16x128xbf16> to vector<16x128xbf16>
    %72 = vector.shape_cast %69 : vector<16x128xbf16> to vector<1x16x128xbf16>
    tpu.vector_store %arg2[%c3_29, %c0_30, %c0_31], %72 {strides = array<i32>} : memref<4x16x128xbf16, #tpu.memory_space<vmem>>, vector<1x16x128xbf16>,
    %73 = math.absf %64 : vector<16x128xf32>
    %74 = vector.shape_cast %73 : vector<16x128xf32> to vector<1x16x128xf32>
    %cst_32 = arith.constant dense<0.000000e+00> : vector<1xf32>
    %75 = vector.multi_reduction <add>, %74, %cst_32 [1, 2] : vector<1x16x128xf32> to vector<1xf32>
    %76 = vector.shape_cast %75 : vector<1xf32> to vector<1x1x1xf32>
    %77 = vector.extract %76[0, 0, 0] : f32 from vector<1x1x1xf32>
    %78 = tpu.iota {dimensions = array<i32: 0>} : vector<8x128xi32>
    %cst_33 = arith.constant 0.000000e+00 : f32
    %79 = vector.broadcast %cst_33 : f32 to vector<8x128xf32>
    %c0_i32 = arith.constant 0 : i32
    %80 = vector.broadcast %c0_i32 : i32 to vector<8x128xi32>
    %81 = arith.cmpi eq, %78, %80 : vector<8x128xi32>
    %82 = vector.broadcast %14 : f32 to vector<8x128xf32>
    %83 = arith.select %81, %82, %79 : vector<8x128xi1>, vector<8x128xf32>
    %c1_i32 = arith.constant 1 : i32
    %84 = vector.broadcast %c1_i32 : i32 to vector<8x128xi32>
    %85 = arith.cmpi eq, %78, %84 : vector<8x128xi32>
    %86 = vector.broadcast %35 : f32 to vector<8x128xf32>
    %87 = arith.select %85, %86, %83 : vector<8x128xi1>, vector<8x128xf32>
    %c2_i32 = arith.constant 2 : i32
    %88 = vector.broadcast %c2_i32 : i32 to vector<8x128xi32>
    %89 = arith.cmpi eq, %78, %88 : vector<8x128xi32>
    %90 = vector.broadcast %56 : f32 to vector<8x128xf32>
    %91 = arith.select %89, %90, %87 : vector<8x128xi1>, vector<8x128xf32>
    %c3_i32 = arith.constant 3 : i32
    %92 = vector.broadcast %c3_i32 : i32 to vector<8x128xi32>
    %93 = arith.cmpi eq, %78, %92 : vector<8x128xi32>
    %94 = vector.broadcast %77 : f32 to vector<8x128xf32>
    %95 = arith.select %93, %94, %91 : vector<8x128xi1>, vector<8x128xf32>
    %c0_34 = arith.constant 0 : index
    %c0_35 = arith.constant 0 : index
    %c0_36 = arith.constant 0 : index
    %96 = vector.load %arg3[%c0_34, %c0_35, %c0_36] : memref<1x8x128xf32, #tpu.memory_space<vmem>>, vector<1x8x128xf32>
    %97 = vector.shape_cast %96 : vector<1x8x128xf32> to vector<8x128xf32>
    %98 = vector.shape_cast %95 : vector<8x128xf32> to vector<1x8x128xf32>
    tpu.vector_store %arg3[%c0_34, %c0_35, %c0_36], %98 {strides = array<i32>} : memref<1x8x128xf32, #tpu.memory_space<vmem>>, vector<1x8x128xf32>,
    return
  }
  func.func @transform_0(%arg0: i32) -> (i32, i32, i32) {
    %c0_i32 = arith.constant 0 : i32
    %c0_i32_0 = arith.constant 0 : i32
    %c0_i32_1 = arith.constant 0 : i32
    return %c0_i32, %arg0, %c0_i32_0 : i32, i32, i32
  }
  func.func @transform_1(%arg0: i32) -> (i32, i32, i32) {
    %c0_i32 = arith.constant 0 : i32
    %c0_i32_0 = arith.constant 0 : i32
    %c0_i32_1 = arith.constant 0 : i32
    return %c0_i32, %arg0, %c0_i32_0 : i32, i32, i32
  }
  func.func @transform_2(%arg0: i32) -> (i32, i32, i32) {
    %c0_i32 = arith.constant 0 : i32
    %c0_i32_0 = arith.constant 0 : i32
    %c0_i32_1 = arith.constant 0 : i32
    return %arg0, %c0_i32, %c0_i32_0 : i32, i32, i32
  }
}

</mosaic_0001>

<bundles_post_ra>
// kernel: tpu_custom_call.1
= control target key start
LH: loop header
LB: loop body
LE: loop exit
PB: predicated region body
PF: predicated region fallthrough
CT: control target
= control target key end

     0   :  { %8 = vsyncpa [#allocation3], 0  ;;  %s358_s0 = inlined_call_operand.hbm [shape: f32[4,16,128], index: 0, kind: input, shape index: {}]   ;;  %s359_s1 = inlined_call_operand.hbm [shape: bf16[4,16,128], index: 1, kind: output, shape index: {0}]   ;;  %s360_s2 = inlined_call_operand.hbm [shape: f32[1,8,128], index: 2, kind: output, shape index: {1}]  }
   0x1   :  { %9 = vsyncpa [#allocation4], 0 }
   0x2   :  { %10 = vsyncpa [#allocation7], 0  ;;  %s15_s11 = sshll.u32 %s358_s0, 4  ;;  %s318_s12 = smov [#allocation2]   ;;  %s16_s11 = int_to_ptr.hbm [resolvable:$true] %s15_s11 }
   0x3   :  { %s17_s13 = sshll.u32 %s318_s12, 4  ;;  %s319_s14 = smov 128   ;;  %s18_s13 = int_to_ptr.vmem [resolvable:$true] %s17_s13 }
   0x4   :  { %s320_s15 = smov 8  }
   0x5   :  { %23 = dma.hbm_to_vmem [thread:$0]  %s16_s11, 1024, %s18_s13, [#allocation3], %s319_s14, %s319_s14, %s320_s15  }
   0x6   :  { %312 = dma.done.wait [#allocation3], 1024  }
   0x7   :  { %313 = vsyncadd [#allocation3], 4294966272  ;;  %v28_v0 = vld [vmem:[#allocation2] sm:$0xff]  ;;  %v29_v1 = vld [vmem:[#allocation2 + $0x8] sm:$0xff]  ;;  %v321_v4 = vmov 0.0   ;;  %s322_s0 = smov [#allocation5]  }
   0x8   :  { %vm31_vm0 = vcmp.gt.f32.partialorder %v29_v1, 0.0  ;;  %v40_v2 = vand.u32 2147483647, %v28_v0  ;;  %v41_v3 = vand.u32 2147483647, %v29_v1  ;;  %v55_v6 = vmul.f32 0.25, %v28_v0 }
   0x9   :  { %v205_v5 = vsel %vm31_vm0, 1.0, %v321_v4  ;;  %v56_v7 = vmul.f32 0.25, %v29_v1  ;;  %vm30_vm1 = vcmp.gt.f32.partialorder %v28_v0, 0.0  ;;  %v54_v13 = vld [vmem:[#allocation2 + $0x18] sm:$0xff]  ;;  %v53_v15 = vld [vmem:[#allocation2 + $0x10] sm:$0xff]  ;;  %v88_v27 = vld [vmem:[#allocation2 + $0x28] sm:$0xff] }
   0xa   :  { %v42_v8 = vadd.f32 %v41_v3, %v40_v2  ;;  %v58_v9 = vsub.f32 1.0, %v205_v5  ;;  %v204_v10 = vsel %vm30_vm1, 1.0, %v321_v4  ;;  %v87_v30 = vld [vmem:[#allocation2 + $0x20] sm:$0xff]  ;;  %v122_v43 = vld [vmem:[#allocation2 + $0x38] sm:$0xff]  ;;  %v121_v46 = vld [vmem:[#allocation2 + $0x30] sm:$0xff]  ;;  %s173_s16 = sshll.u32 %s322_s0, 4  ;;  %s174_s16 = int_to_ptr.vmem [resolvable:$true] %s173_s16 }
   0xb   :  { %v213_v11 = vpack.c.bf16 %v205_v5, %v204_v10  ;;  %v57_v12 = vsub.f32 1.0, %v204_v10  ;;  %s175_s19 = sshll.u32 %s359_s1, 4  ;;  %s323_s20 = smov 64   ;;  %s176_s19 = int_to_ptr.hbm [resolvable:$true] %s175_s19 }
   0xc   :  { %v60_v14 = vmul.f32 %v58_v9, %v56_v7  ;;  %43 = vadd.xlane.f32.xlu0 %v42_v8  ;;  %s324_s21 = smov 4   ;;  %s325_s24 = smov [#allocation6]  }
   0xd   :  { %214 = vst [vmem:[#allocation5] sm:$0xff] %v213_v11   ;;  %v59_v16 = vmul.f32 %v57_v12, %v55_v6  ;;  %s187_s25 = sshll.u32 %s325_s24, 4  ;;  %s189_s28 = sshll.u32 %s360_s2, 4  ;;  %s188_s25 = int_to_ptr.vmem [resolvable:$true] %s187_s25  ;;  %s190_s28 = int_to_ptr.hbm [resolvable:$true] %s189_s28 }
   0xe   :  { %v62_v17 = vadd.f32 %v60_v14, %v54_v13 }
   0xf   :  { %v61_v18 = vadd.f32 %v59_v16, %v53_v15 }
  0x10   :  { %v75_v19 = vand.u32 2147483647, %v62_v17  ;;  %vm64_vm2 = vcmp.gt.f32.partialorder %v62_v17, 0.0  ;;  %v90_v20 = vmul.f32 0.25, %v62_v17 }
  0x11   :  { %v74_v21 = vand.u32 2147483647, %v61_v18  ;;  %vm63_vm3 = vcmp.gt.f32.partialorder %v61_v18, 0.0  ;;  %v207_v22 = vsel %vm64_vm2, 1.0, %v321_v4  ;;  %v89_v23 = vmul.f32 0.25, %v61_v18 }
  0x12   :  { %v206_v24 = vsel %vm63_vm3, 1.0, %v321_v4  ;;  %v92_v25 = vsub.f32 1.0, %v207_v22 }
  0x13   :  { %v76_v26 = vadd.f32 %v75_v19, %v74_v21  ;;  %v91_v28 = vsub.f32 1.0, %v206_v24  ;;  %v216_v29 = vpack.c.bf16 %v207_v22, %v206_v24  ;;  %v154_v21 = vlaneseq }
  0x14   :  { %v94_v31 = vmul.f32 %v92_v25, %v90_v20 }
  0x15   :  { %77 = vadd.xlane.f32.xlu0 %v76_v26  ;;  %v93_v32 = vmul.f32 %v91_v28, %v89_v23  ;;  %217 = vst [vmem:[#allocation5 + $0x8] sm:$0xff] %v216_v29   ;;  %v155_v22 = vshrl.u32 %v154_v21, 7 }
  0x16   :  { %v96_v33 = vadd.f32 %v94_v31, %v88_v27 }
  0x17   :  { %v95_v34 = vadd.f32 %v93_v32, %v87_v30  ;;  %vm156_vm8 = vcmp.eq.s32.totalorder %v155_v22, 0  ;;  %vm159_vm9 = vcmp.eq.s32.totalorder %v155_v22, 1  ;;  %vm162_vm10 = vcmp.eq.s32.totalorder %v155_v22, 2 }
  0x18   :  { %vm98_vm4 = vcmp.gt.f32.partialorder %v96_v33, 0.0  ;;  %v109_v35 = vand.u32 2147483647, %v96_v33  ;;  %v124_v36 = vmul.f32 0.25, %v96_v33  ;;  %vm165_vm11 = vcmp.eq.s32.totalorder %v155_v22, 3 }
  0x19   :  { %v108_v37 = vand.u32 2147483647, %v95_v34  ;;  %vm97_vm5 = vcmp.gt.f32.partialorder %v95_v34, 0.0  ;;  %v209_v38 = vsel %vm98_vm4, 1.0, %v321_v4  ;;  %v123_v39 = vmul.f32 0.25, %v95_v34 }
  0x1a   :  { %v208_v40 = vsel %vm97_vm5, 1.0, %v321_v4  ;;  %v126_v41 = vsub.f32 1.0, %v209_v38 }
  0x1b   :  { %v110_v42 = vadd.f32 %v109_v35, %v108_v37  ;;  %v125_v44 = vsub.f32 1.0, %v208_v40  ;;  %v219_v45 = vpack.c.bf16 %v209_v38, %v208_v40 }
  0x1c   :  { %v128_v47 = vmul.f32 %v126_v41, %v124_v36 }
  0x1d   :  { %111 = vadd.xlane.f32.xlu1 %v110_v42  ;;  %v127_v48 = vmul.f32 %v125_v44, %v123_v39  ;;  %220 = vst [vmem:[#allocation5 + $0x10] sm:$0xff] %v219_v45  }
  0x1e   :  { %v130_v49 = vadd.f32 %v128_v47, %v122_v43 }
  0x1f   :  { %v129_v50 = vadd.f32 %v127_v48, %v121_v46 }
  0x20   :  { %vm132_vm6 = vcmp.gt.f32.partialorder %v130_v49, 0.0  ;;  %v143_v51 = vand.u32 2147483647, %v130_v49 }
  0x21   :  { %v211_v52 = vsel %vm132_vm6, 1.0, %v321_v4  ;;  %v142_v53 = vand.u32 2147483647, %v129_v50  ;;  %vm131_vm7 = vcmp.gt.f32.partialorder %v129_v50, 0.0 }
  0x22   :  { %v210_v54 = vsel %vm131_vm7, 1.0, %v321_v4 }
  0x23   :  { %v144_v55 = vadd.f32 %v143_v51, %v142_v53  ;;  %v222_v56 = vpack.c.bf16 %v211_v52, %v210_v54 }
  0x25   :  { %145 = vadd.xlane.f32.xlu1 %v144_v55  ;;  %223 = vst [vmem:[#allocation5 + $0x18] sm:$0xff] %v222_v56  }
  0x26   :  { %181 = dma.vmem_to_hbm [thread:$0]  %s174_s16, 512, %s176_s19, [#allocation4], %s323_s20, %s323_s20, %s324_s21  }
  0x7f   :  { %v44_v57 = vpop.xlane.xlu0 %43 }
  0x80   :  { %v45_v58 = vrot.slane %v44_v57, 4 }
  0x82   :  { %v46_v59 = vadd.f32 %v45_v58, %v44_v57 }
  0x84   :  { %v47_v60 = vrot.slane %v46_v59, 2 }
  0x86   :  { %v48_v61 = vadd.f32 %v47_v60, %v46_v59 }
  0x88   :  { %v78_v62 = vpop.xlane.xlu0 %77  ;;  %v49_v63 = vrot.slane %v48_v61, 1 }
  0x89   :  { %v79_v0 = vrot.slane %v78_v62, 4 }
  0x8a   :  { %v50_v1 = vadd.f32 %v49_v63, %v48_v61 }
  0x8b   :  { %v80_v2 = vadd.f32 %v79_v0, %v78_v62 }
  0x8c   :  { %224 = vpush %v50_v1 }
  0x8d   :  { %v81_v3 = vrot.slane %v80_v2, 2 }
  0x8f   :  { %v82_v4 = vadd.f32 %v81_v3, %v80_v2 }
  0x90   :  { %v112_v5 = vpop.xlane.xlu1 %111 }
  0x91   :  { %v113_v6 = vrot.slane %v112_v5, 4  ;;  %v83_v7 = vrot.slane %v82_v4, 1 }
  0x93   :  { %v114_v8 = vadd.f32 %v113_v6, %v112_v5  ;;  %v84_v9 = vadd.f32 %v83_v7, %v82_v4 }
  0x95   :  { %v115_v10 = vrot.slane %v114_v8, 2  ;;  %226 = vpush %v84_v9 }
  0x97   :  { %v116_v11 = vadd.f32 %v115_v10, %v114_v8 }
  0x98   :  { %v146_v12 = vpop.xlane.xlu1 %145 }
  0x99   :  { %v147_v13 = vrot.slane %v146_v12, 4  ;;  %v117_v14 = vrot.slane %v116_v11, 1 }
  0x9b   :  { %v148_v15 = vadd.f32 %v147_v13, %v146_v12  ;;  %v118_v16 = vadd.f32 %v117_v14, %v116_v11 }
  0x9d   :  { %v149_v17 = vrot.slane %v148_v15, 2  ;;  %228 = vpush %v118_v16 }
  0x9f   :  { %v150_v18 = vadd.f32 %v149_v17, %v148_v15 }
  0xa1   :  { %v151_v19 = vrot.slane %v150_v18, 1 }
  0xa3   :  { %v152_v20 = vadd.f32 %v151_v19, %v150_v18 }
  0xa5   :  { %230 = vpush %v152_v20 }
  0xbd   :  { %s225_s1 = spop %224 }
  0xbe   :  { %v157_v23 = vstv %s225_s1 }
  0xbf   :  { %v158_v24 = vsel %vm156_vm8, %v157_v23, 0.0 }
  0xc6   :  { %s227_s22 = spop %226 }
  0xc7   :  { %v160_v25 = vstv %s227_s22 }
  0xc8   :  { %v161_v27 = vsel %vm159_vm9, %v160_v25, %v158_v24 }
  0xce   :  { %s229_s23 = spop %228 }
  0xcf   :  { %v163_v26 = vstv %s229_s23 }
  0xd0   :  { %v164_v28 = vsel %vm162_vm10, %v163_v26, %v161_v27 }
  0xd6   :  { %s231_s29 = spop %230 }
  0xd7   :  { %v166_v29 = vstv %s231_s29 }
  0xd8   :  { %v167_v30 = vsel %vm165_vm11, %v166_v29, %v164_v28 }
  0xd9   :  { %168 = vst [vmem:[#allocation6] sm:$0xff] %v167_v30 }
  0xda   :  { %192 = dma.vmem_to_hbm [thread:$0]  %s188_s25, 128, %s190_s28, [#allocation7]  }
  0xdb   :  { %314 = dma.done.wait [#allocation4], 512  }
  0xdc   :  { %315 = vsyncadd [#allocation4], 4294966784 }
  0xdd   :  { %316 = dma.done.wait [#allocation7], 128  }
  0xde   :  { %317 = vsyncadd [#allocation7], 4294967168 }
  0xdf   :  { %201 = vsyncpa [#allocation3], 1 }
  0xe0   :  { %202 = vsyncpa [#allocation4], 1 }
  0xe1   :  { %203 = vsyncpa [#allocation7], 1 }

</bundles_post_ra>
